<compile_context>
chip_gen: v7x
topology: tpu7x:2x2x1
jax: 0.10.0
libtpu: 0.0.40
codegen_flags: <defaults>
</compile_context>

<pallas_src>
import functools

import jax
import jax.numpy as jnp
from jax.experimental import pallas as pl
from jax.experimental.pallas import tpu as pltpu

NUM_CLASS = 6
FPN_CH = 256  # FPN output channels feeding the prediction conv


def _round_up(n, m):
    return (n + m - 1) // m * m


def _pick_tile(hw, target, batch):
    """Largest multiple-of-128 tile that divides round_up(hw,128), <= target.

    Prefers a tiling with >= 2 total grid steps so both v7x TensorCores get
    work when batch == 1.
    """
    hw128 = _round_up(hw, 128)
    k = hw128 // 128
    target = max(128, min(target, hw128))
    cands = [128 * d for d in range(1, k + 1) if k % d == 0 and 128 * d <= target]
    tn = max(cands)
    if batch * (hw128 // tn) < 2:  # give the second TensorCore (v7x) a tile
        smaller = [t for t in cands if hw128 // t >= 2]
        if smaller:
            tn = max(smaller)
    return tn, hw128


def _head_kernel(w_ref, b_ref, x_ref, o_ref, *, num_class, hw, tn, mask_tail):
    # w_ref: (out_ch, 256)  fused weight (transposed), same dtype as x
    # b_ref: (out_ch, 1)    fused bias (f32 column, broadcast over lanes)
    # x_ref: (256, tn)      channels-on-sublane, pixels-on-lane tile
    # o_ref: (out_ch, tn)
    y = jnp.dot(w_ref[...], x_ref[...], preferred_element_type=jnp.float32)
    y = y + b_ref[...]

    if mask_tail:
        # Last tile extends past HW: out-of-bounds lanes hold undefined data.
        # Zero them before the transcendental so no inf/NaN is generated
        # (the out-of-bounds output lanes are dropped by Pallas anyway).
        col = pl.program_id(1) * tn + jax.lax.broadcasted_iota(jnp.int32, y.shape, 1)
        y = jnp.where(col < hw, y, 0.0)

    # rows 0..num_class-1 -> sigmoid (center); rows num_class.. -> exp
    # (offset & size).  One exp + one approx reciprocal total (EUP slot).
    row = jax.lax.broadcasted_iota(jnp.int32, y.shape, 0)
    is_center = row < num_class
    e = jnp.exp(jnp.where(is_center, -y, y))
    out = jnp.where(is_center, pl.reciprocal(1.0 + e, approx=True), e)
    o_ref[...] = out.astype(o_ref.dtype)


def centernet_head(feed_nchw, params, *, num_class=NUM_CLASS, tn=4096):
    """feed_nchw: (B, 256, H, W) f32 or bf16. Returns (B, num_class+4, H, W) f32.

    Keep tn <= 4096 under the default scoped VMEM (v5e: 16 MiB); on v7x do not
    exceed tn=8192 without setting vmem_limit_bytes (only 64 MiB physical VMEM).
    """
    wp, bp, wc, bc, ws, bs = params
    B, C, H, W = feed_nchw.shape
    assert C == FPN_CH
    out_ch = num_class + 4
    HW = H * W

    # --- trace-time fusion of the three 1x1 convs (f32) ---------------------
    w_fused = jnp.concatenate(
        [wp[:, :num_class] @ wc,
         wp[:, num_class:num_class + 2],
         wp[:, num_class + 2:num_class + 4] @ ws], axis=1)            # (C, out_ch)
    b_fused = jnp.concatenate(
        [bp[:, :num_class] @ wc + bc,
         bp[:, num_class:num_class + 2],
         bp[:, num_class + 2:num_class + 4] @ ws + bs], axis=1)       # (1, out_ch)
    w_t = jnp.transpose(w_fused).astype(feed_nchw.dtype)              # (out_ch, C)
    b_col = jnp.transpose(b_fused).astype(jnp.float32)                # (out_ch, 1)

    # --- layout: NCHW -> (B, C, H*W), no transpose, no padding --------------
    x = feed_nchw.reshape(B, C, HW)

    tn, HW128 = _pick_tile(HW, tn, B)
    n_tiles = HW128 // tn                 # == cdiv(HW, tn) by construction
    mask_tail = (n_tiles * tn) != HW      # only when HW % 128 != 0

    kernel = functools.partial(_head_kernel, num_class=num_class,
                               hw=HW, tn=tn, mask_tail=mask_tail)

    itemsize = jnp.dtype(feed_nchw.dtype).itemsize
    cost = pl.CostEstimate(
        flops=2 * B * HW * out_ch * C,
        transcendentals=2 * B * HW * out_ch,
        bytes_accessed=B * HW * C * itemsize + B * HW * out_ch * 4,
    )

    out = pl.pallas_call(
        kernel,
        out_shape=jax.ShapeDtypeStruct((B, out_ch, HW), jnp.float32),
        grid_spec=pltpu.PrefetchScalarGridSpec(
            num_scalar_prefetch=0,
            grid=(B, n_tiles),
            in_specs=[
                pl.BlockSpec((out_ch, C), lambda b, i: (0, 0)),       # fused weight
                pl.BlockSpec((out_ch, 1), lambda b, i: (0, 0)),       # fused bias
                pl.BlockSpec((None, C, tn), lambda b, i: (b, 0, i)),  # pixel tile
            ],
            out_specs=pl.BlockSpec((None, out_ch, tn), lambda b, i: (b, 0, i)),
        ),
        compiler_params=pltpu.CompilerParams(
            dimension_semantics=("parallel", "parallel")),
        cost_estimate=cost,
    )(w_t, b_col, x)

    return out.reshape(B, out_ch, H, W)


def make_params(key, num_class=NUM_CLASS):
    """Deterministic synthetic parameters matching CenterNet.__init__ shapes.

    1x1 conv weights are stored as (in_ch, out_ch) matrices (== transposed
    squeezed PyTorch Conv2d weight (out, in, 1, 1))."""
    out_ch = num_class + 4
    k1, k2, k3, k4 = jax.random.split(key, 4)
    wp = jax.random.normal(k1, (FPN_CH, out_ch), jnp.float32) * 0.02
    bp = jax.random.normal(k2, (1, out_ch), jnp.float32) * 0.02
    wc = jax.random.normal(k3, (num_class, num_class), jnp.float32) * 0.1
    bc = jnp.full((1, num_class), -2.19, jnp.float32)   # center_feed.bias.fill_(-2.19)
    ws = jax.random.normal(k4, (2, 2), jnp.float32) * 0.1
    bs = jnp.full((1, 2), 5.8, jnp.float32)             # size_feed.bias.fill_(5.8)
    return (wp, bp, wc, bc, ws, bs)


def reference_head(feed_nchw, params, num_class=NUM_CLASS):
    """Pure-JAX reference mirroring the (unfused) PyTorch forward semantics."""
    wp, bp, wc, bc, ws, bs = params
    B, C, H, W = feed_nchw.shape
    x = jnp.transpose(feed_nchw.astype(jnp.float32), (0, 2, 3, 1)).reshape(-1, C)
    pred = x @ wp + bp
    center = pred[:, :num_class]
    offset = pred[:, num_class:num_class + 2]
    size = pred[:, num_class + 2:]
    center = jax.nn.sigmoid(center @ wc + bc)
    offset = jnp.exp(offset)
    size = jnp.exp(size @ ws + bs)
    out = jnp.concatenate([center, offset, size], axis=1)
    return jnp.transpose(out.reshape(B, H, W, num_class + 4), (0, 3, 1, 2))


if __name__ == "__main__":
    key = jax.random.PRNGKey(0)
    kp, kf, kg = jax.random.split(key, 3)
    params = make_params(kp)
    out_ch = NUM_CLASS + 4

    # --- 1) f32 feed, 16x16 spatial (divides evenly) ------------------------
    feed = jax.random.normal(kf, (2, FPN_CH, 16, 16), jnp.float32)
    out = jax.block_until_ready(centernet_head(feed, params))
    ref = reference_head(feed, params)
    assert out.shape == (2, out_ch, 16, 16)
    # Weight fusion changes reduction order of the tiny K=6/K=2 matmuls and
    # exp(~5.8) amplifies pre-activation rounding ~330x; approx reciprocal in
    # the sigmoid adds ~2^-12 rel err.  Hence the slightly loose tolerance.
    assert jnp.allclose(out, ref, atol=3e-3, rtol=3e-3), float(jnp.max(jnp.abs(out - ref)))

    # --- 2) ragged spatial (13x11 -> HW=143, exercises in-kernel tail mask) --
    feed_r = jax.random.normal(kg, (2, FPN_CH, 13, 11), jnp.float32)
    out_r = jax.block_until_ready(centernet_head(feed_r, params))
    ref_r = reference_head(feed_r, params)
    assert out_r.shape == (2, out_ch, 13, 11)
    assert jnp.allclose(out_r, ref_r, atol=3e-3, rtol=3e-3), float(jnp.max(jnp.abs(out_r - ref_r)))

    # --- 3) bf16 feed (halves the dominant HBM read; f32 accumulate) ---------
    feed_bf = feed.astype(jnp.bfloat16)
    out_bf = jax.block_until_ready(centernet_head(feed_bf, params))
    ref_bf = reference_head(feed_bf, params)
    assert out_bf.dtype == jnp.float32 and out_bf.shape == (2, out_ch, 16, 16)
    assert bool(jnp.all(jnp.isfinite(out_bf)))
    assert jnp.allclose(out_bf, ref_bf, atol=5e-2, rtol=5e-2), float(jnp.max(jnp.abs(out_bf - ref_bf)))

    print("KERNEL_OK")
</pallas_src>

<mosaic_0001>
module attributes {stable_mosaic.version = 11 : i64} {
  func.func @_head_kernel(%arg0: i32, %arg1: i32, %arg2: memref<10x256xf32, #tpu.memory_space<vmem>>, %arg3: memref<10x1xf32, #tpu.memory_space<vmem>>, %arg4: memref<1x256x256xf32, #tpu.memory_space<vmem>>, %arg5: memref<1x10x256xf32, #tpu.memory_space<vmem>>) attributes {dimension_semantics = [#tpu.dimension_semantics<parallel>, #tpu.dimension_semantics<parallel>], iteration_bounds = array<i64: 2, 1>, scalar_prefetch = 0 : i64, scratch_operands = 0 : i64, tpu.core_type = #tpu.core_type<tc>, window_params = [{pipeline_mode = #tpu.pipeline_mode<synchronous>, transform_indices = @transform_0, window_bounds = array<i64: 10, 256>}, {pipeline_mode = #tpu.pipeline_mode<synchronous>, transform_indices = @transform_1, window_bounds = array<i64: 10, 1>}, {transform_indices = @transform_2, window_bounds = array<i64: 1, 256, 256>}, {transform_indices = @transform_3, window_bounds = array<i64: 1, 10, 256>}]} {
    %c0 = arith.constant 0 : index
    %c0_0 = arith.constant 0 : index
    %0 = vector.load %arg2[%c0, %c0_0] : memref<10x256xf32, #tpu.memory_space<vmem>>, vector<10x256xf32>
    %c0_1 = arith.constant 0 : index
    %c0_2 = arith.constant 0 : index
    %c0_3 = arith.constant 0 : index
    %1 = vector.load %arg4[%c0_1, %c0_2, %c0_3] : memref<1x256x256xf32, #tpu.memory_space<vmem>>, vector<1x256x256xf32>
    %2 = vector.shape_cast %1 : vector<1x256x256xf32> to vector<256x256xf32>
    %cst = arith.constant dense<0.000000e+00> : vector<10x256xf32>
    %3 = tpu.matmul %0, %2, %cst {dimension_numbers = #tpu.dot_dimension_numbers<[1], [0], [0], [1], [0, 0, 1, 1], [], []>} : vector<10x256xf32>, vector<256x256xf32>, vector<10x256xf32> -> vector<10x256xf32>
    %c0_4 = arith.constant 0 : index
    %c0_5 = arith.constant 0 : index
    %4 = vector.load %arg3[%c0_4, %c0_5] : memref<10x1xf32, #tpu.memory_space<vmem>>, vector<10x1xf32>
    %5 = vector.broadcast %4 : vector<10x1xf32> to vector<10x256xf32>
    %6 = arith.addf %3, %5 : vector<10x256xf32>
    %7 = tpu.iota {dimensions = array<i32: 0>} : vector<10x256xi32>
    %c6_i32 = arith.constant 6 : i32
    %8 = vector.broadcast %c6_i32 : i32 to vector<10x256xi32>
    %9 = arith.cmpi slt, %7, %8 : vector<10x256xi32>
    %cst_6 = arith.constant 0.000000e+00 : f32
    %10 = vector.broadcast %cst_6 : f32 to vector<10x256xf32>
    %11 = arith.subf %10, %6 : vector<10x256xf32>
    %12 = arith.select %9, %11, %6 : vector<10x256xi1>, vector<10x256xf32>
    %13 = math.exp %12 : vector<10x256xf32>
    %cst_7 = arith.constant 1.000000e+00 : f32
    %14 = vector.broadcast %cst_7 : f32 to vector<10x256xf32>
    %15 = arith.addf %14, %13 : vector<10x256xf32>
    %16 = tpu.reciprocal %15 {approx = true} : vector<10x256xf32> -> vector<10x256xf32>
    %17 = arith.select %9, %16, %13 : vector<10x256xi1>, vector<10x256xf32>
    %c0_8 = arith.constant 0 : index
    %c0_9 = arith.constant 0 : index
    %c0_10 = arith.constant 0 : index
    %18 = vector.load %arg5[%c0_8, %c0_9, %c0_10] : memref<1x10x256xf32, #tpu.memory_space<vmem>>, vector<1x10x256xf32>
    %19 = vector.shape_cast %18 : vector<1x10x256xf32> to vector<10x256xf32>
    %20 = vector.shape_cast %17 : vector<10x256xf32> to vector<1x10x256xf32>
    tpu.vector_store %arg5[%c0_8, %c0_9, %c0_10], %20 {strides = array<i32>} : memref<1x10x256xf32, #tpu.memory_space<vmem>>, vector<1x10x256xf32>,
    return
  }
  func.func @transform_0(%arg0: i32, %arg1: i32) -> (i32, i32) {
    %c0_i32 = arith.constant 0 : i32
    %c0_i32_0 = arith.constant 0 : i32
    %c0_i32_1 = arith.constant 0 : i32
    return %c0_i32, %c0_i32_0 : i32, i32
  }
  func.func @transform_1(%arg0: i32, %arg1: i32) -> (i32, i32) {
    %c0_i32 = arith.constant 0 : i32
    %c0_i32_0 = arith.constant 0 : i32
    %c0_i32_1 = arith.constant 0 : i32
    return %c0_i32, %c0_i32_0 : i32, i32
  }
  func.func @transform_2(%arg0: i32, %arg1: i32) -> (i32, i32, i32) {
    %c0_i32 = arith.constant 0 : i32
    %c0_i32_0 = arith.constant 0 : i32
    return %arg0, %c0_i32, %arg1 : i32, i32, i32
  }
  func.func @transform_3(%arg0: i32, %arg1: i32) -> (i32, i32, i32) {
    %c0_i32 = arith.constant 0 : i32
    %c0_i32_0 = arith.constant 0 : i32
    return %arg0, %c0_i32, %arg1 : i32, i32, i32
  }
}

</mosaic_0001>

<bundles_post_ra>
// kernel: tpu_custom_call.1
= control target key start
LH: loop header
LB: loop body
LE: loop exit
PB: predicated region body
PF: predicated region fallthrough
CT: control target
= control target key end

     0   :  { %8 = vsyncpa [#allocation3], 0  ;;  %s1109_s0 = inlined_call_operand.hbm [shape: f32[10,256], index: 0, kind: input, shape index: {}]   ;;  %s1110_s1 = inlined_call_operand.vmem [shape: f32[10,1], index: 1, kind: input, shape index: {}]   ;;  %s1111_s2 = inlined_call_operand.hbm [shape: f32[2,256,256], index: 2, kind: input, shape index: {}]   ;;  %s1112_s3 = inlined_call_operand.vmem [shape: f32[2,10,256], index: 3, kind: output, shape index: {}]  }
   0x1   :  { %9 = vsyncpa [#allocation5], 0 }
   0x2   :  { %11 = vsyncpa [#allocation5 + $0x1], 0  ;;  %s869_s12 = smov 0   ;;  %s871_s13 = smov 0  }
   0x3   :  { %s873_s14 = smov 0   ;;  %s875_s15 = smov 0  }
   0x4   :  { %s877_s16 = smov 0   ;;  %s879_s17 = smov 0  }
   0x5 LB: > { %s535_s18 = sadd.s32 4294967295, %s842_s17   ;;  %p93_p0 = scmp.ne.s32.totalorder %s826_s13, %s822_s12  ;;  %s842_s17 = sphi %s879_s17, %s17_s17   ;;  %s838_s16 = sphi %s877_s16, %s1129_s16   ;;  %s834_s15 = sphi %s875_s15, %s1128_s15   ;;  %s830_s14 = sphi %s873_s14, %s1127_s14   ;;  %s826_s13 = sphi %s871_s13, %s1126_s13   ;;  %s822_s12 = sphi %s869_s12, %s1125_s12  }
   0x6   : > { %p899_p1 = scmp.eq.s32.totalorder %s535_s18, 0  ;;  %p537_p2 = scmp.ge.s32.totalorder %s842_s17, 1 }
   0x7   : > { %p132_p3 = scmp.lt.s32.totalorder %s842_s17, 3  ;;  %s844_s22 = smov [#allocation2]  }
   0x8   : > { %s1117_s19 = scalar_select %p899_p1, 1, 0 }
   0x9   : > { %p907_p4 = por %p899_p1, %p93_p0  ;;  %p911_p5 = pnand %p537_p2, %p132_p3 }
   0xa   : > { %s144_s23 = sshll.u32 %s844_s22, 4  ;;  %s29_s25 = sadd.s32 1, %s838_s16  ;;  %s145_s23 = int_to_ptr.vmem [resolvable:$true] %s144_s23 }
   0xb   : > { %s1118_s20 = scalar_select %p907_p4, 1, 0 }
   0xc   : > { %s1119_s21 = scalar_select %p911_p5, 1, 0 }
   0xd   : > { %p654_p6 = pneg %p911_p5  ;;  %s730_s28 = scalar_lea.hbm %s1109_s0, 512 }
   0xe   : > { %p731_p8 = scmp.ne.s32.totalorder %s1109_s0, %s730_s28  ;;  %p737_p12 = scmp.lt.u32.totalorder %s730_s28, %s1109_s0 }
   0xf   : > { %p919_p7 = pnand %p654_p6, %p899_p1 }
  0x11   : > { %p732_p9 = pneg %p919_p7 }
  0x13   : > { %p733_p10 = pnand %p732_p9, %p731_p8 }
  0x15   : > { %p734_p11 = pneg %p733_p10 }
  0x17   : > { %p739_p13 = pnand %p737_p12, %p734_p11 }
  0x19   : > { %742 = shalt.err (!%p739_p13)
}
  0x1a   : > { %s743_s6 = scalar_lea.vmem %s145_s23, 512  ;;  %p751_p6 = scmp.lt.s32.totalorder %s145_s23, %s145_s23 }
  0x1b   : > { %p744_p0 = scmp.ne.s32.totalorder %s145_s23, %s743_s6  ;;  %p752_p4 = scmp.lt.s32.totalorder %s743_s6, %s743_s6 }
  0x1d   : > { %p746_p2 = pnand %p744_p0, %p732_p9  ;;  %p753_p1 = por %p752_p4, %p751_p6 }
  0x1f   : > { %p747_p3 = pneg %p746_p2 }
  0x21   : > { %p754_p5 = pnand %p753_p1, %p747_p3 }
  0x23   : > { %757 = shalt.err (!%p754_p5)
}
  0x24   : > { %s845_s7 = smov 256   ;;  %s846_s8 = smov 16  }
  0x25   : > { %657 = dma.hbm_to_vmem [thread:$0]  (!%p919_p7), %s1109_s0, 512, %s145_s23, [#allocation3], %s845_s7, %s845_s7, %s846_s8  }
  0x26   : > { %p31_p1 = scmp.ge.s32.totalorder %s29_s25, 2  ;;  %s80_s11 = sadd.s32 1, %s830_s14 }
  0x27   : > { %p87_p4 = scmp.ne.s32.totalorder %s830_s14, %s826_s13  ;;  %p88_p5 = scmp.eq.s32.totalorder %s842_s17, 0 }
  0x28   : > { %s1131_s25 = smov (%p31_p1, %s29_s25), 0  ;;  %p663_p9 = scmp.lt.s32.totalorder %s842_s17, 2 }
  0x29   : > { %p89_p8 = por %p88_p5, %p87_p4  ;;  %s75_s12 = ssub.s32 %s838_s16, %s1131_s25 }
  0x2a   : > { %s161_s18 = sand.u32 1, %s830_s14   ;;  %p78_p10 = scmp.eq.s32.totalorder %s75_s12, 0 }
  0x2b   : > { %s540_s22 = sshll.u32 %s161_s18, 9  ;;  %s550_s24 = sshll.u32 %s838_s16, 13 }
  0x2c   : > { %s955_s26 = scalar_select %p78_p10, %s830_s14, %s80_s11  }
  0x2d   : > { %s960_s23 = scalar_lea.hbm %s1111_s2, %s550_s24  ;;  %s165_s29 = scalar_lea.vmem [#allocation4], %s540_s22 }
  0x2e   : > { %s174_s30 = sshll.u32 %s165_s29, 4  ;;  %p962_p7 = pnand %p663_p9, %p89_p8  ;;  %s966_s30 = int_to_ptr.vmem [resolvable:$true] %s174_s30 }
  0x2f   : > { %s968_s5 = scalar_lea.sflag [#allocation5], %s161_s18  ;;  %s758_s6 = scalar_lea.hbm %s960_s23, 8192 }
  0x30   : > { %p759_p11 = scmp.ne.s32.totalorder %s960_s23, %s758_s6  ;;  %p760_p12 = pneg %p962_p7 }
  0x31   : > { %s763_s11 = scalar_lea.hbm %s1111_s2, 16384  ;;  %p764_p2 = scmp.lt.u32.totalorder %s960_s23, %s1111_s2 }
  0x32   : > { %p761_p13 = pnand %p760_p12, %p759_p11  ;;  %p765_p3 = scmp.lt.u32.totalorder %s763_s11, %s758_s6 }
  0x33   : > { %p767_p1 = scmp.lt.u32.totalorder %s758_s6, %s960_s23 }
  0x34   : > { %p762_p0 = pneg %p761_p13  ;;  %p766_p6 = por %p765_p3, %p764_p2 }
  0x36   : > { %p768_p4 = por %p767_p1, %p766_p6 }
  0x38   : > { %p769_p5 = pnand %p768_p4, %p762_p0 }
  0x3a   : > { %772 = shalt.err (!%p769_p5)
}
  0x3b   : > { %s773_s18 = scalar_lea.vmem %s966_s30, 8192  ;;  %s847_s24 = smov [#allocation4]  }
  0x3c   : > { %p774_p8 = scmp.ne.s32.totalorder %s966_s30, %s773_s18  ;;  %s778_s27 = sshll.u32 %s847_s24, 4  ;;  %s779_s27 = int_to_ptr.vmem [resolvable:$false] %s778_s27 }
  0x3d   : > { %s780_s28 = scalar_lea.vmem %s779_s27, 16384  ;;  %p781_p11 = scmp.lt.s32.totalorder %s966_s30, %s779_s27 }
  0x3e   : > { %p776_p9 = pnand %p774_p8, %p760_p12  ;;  %p782_p13 = scmp.lt.s32.totalorder %s780_s28, %s773_s18 }
  0x40   : > { %p777_p10 = pneg %p776_p9  ;;  %p783_p2 = por %p782_p13, %p781_p11 }
  0x42   : > { %p784_p3 = pnand %p783_p2, %p777_p10 }
  0x44   : > { %787 = shalt.err (!%p784_p3)
}
  0x45   : > { %661 = dma.hbm_to_vmem [thread:$0]  (!%p962_p7), %s960_s23, 8192, %s966_s30, %s968_s5, %s845_s7, %s845_s7, %s846_s8  }
  0x46   : > { %p1122_p12 = scmp.ne.s32.totalorder %s1119_s21, 0 }
  0x47   : > { %p1123_p0 = scmp.ne.s32.totalorder (!%p1122_p12), %s1117_s19, 0 }
  0x48   : > { %186 = sbr.rel (%p1122_p12) target bundleno = 397 (0x18d), region = 32 }
  0x4f   : > { %813 = dma.done.wait (%p1123_p0), [#allocation3], 512  }
  0x50   : > { %815 = vsyncadd (%p1123_p0), [#allocation3], 4294966784  ;;  %s192_s29 = sand.u32 1, %s826_s13   ;;  %p1124_p6 = scmp.ne.s32.totalorder %s1118_s20, 0 }
  0x51   : > { %s545_s4 = sshll.u32 %s192_s29, 9  ;;  %s193_s6 = scalar_lea.sflag [#allocation5], %s192_s29 }
  0x52   : > { %s1006_s9 = scalar_lea.vmem [#allocation4], %s545_s4 }
  0x53   : > { %817 = dma.done.wait (%p1124_p6), %s193_s6, 8192  }
  0x54   : > { %819 = vsyncadd (%p1124_p6), %s193_s6, 4294959104  ;;  %v848_v0 = vmov 0   ;;  %v239_v1 = vld [vmem:[%s1006_s9 + $0x8] sm:$0xff]  ;;  %v241_v2 = vld [vmem:[%s1006_s9 + $0x18] sm:$0xff]  ;;  %p225_p7 = scmp.lt.s32.totalorder %s834_s15, 1 }
  0x55   : > { %717 = vset.pattern.permute.xlu0 %v848_v0  ;;  %v238_v3 = vld [vmem:[%s1006_s9] sm:$0xff]  ;;  %v552_v4 = vpack.c.bf16 %v241_v2, %v239_v1  ;;  %v240_v5 = vld [vmem:[%s1006_s9 + $0x10] sm:$0xff]  ;;  %v243_v6 = vld [vmem:[%s1006_s9 + $0x28] sm:$0xff] }
  0x56   : > { %v245_v7 = vld [vmem:[%s1006_s9 + $0x38] sm:$0xff]  ;;  %v554_v8 = vpack.c.bf16 %v240_v5, %v238_v3  ;;  %v242_v10 = vld [vmem:[%s1006_s9 + $0x20] sm:$0xff]  ;;  %v244_v11 = vld [vmem:[%s1006_s9 + $0x30] sm:$0xff]  ;;  %s1133_s15 = smov (!%p225_p7, %s834_s15), 1 }
  0x57   : > { %v556_v9 = vpack.c.bf16 %v245_v7, %v243_v6  ;;  %v247_v12 = vld [vmem:[%s1006_s9 + $0x48] sm:$0xff]  ;;  %553 = vmatprep.subr.bf16.mxu0 %v552_v4  ;;  %616 = vmatprep.subr.bf16.mxu1 %v552_v4  ;;  %v249_v13 = vld [vmem:[%s1006_s9 + $0x58] sm:$0xff]  ;;  %v558_v14 = vpack.c.bf16 %v244_v11, %v242_v10  ;;  %v246_v16 = vld [vmem:[%s1006_s9 + $0x40] sm:$0xff]  ;;  %s551_s8 = sshll.u32 %s1133_s15, 5 }
  0x58   : > { %555 = vmatpush1.bf16.msra.mxu0 %v554_v8  ;;  %632 = vmatpush1.bf16.msra.mxu1 %v554_v8  ;;  %v560_v15 = vpack.c.bf16 %v249_v13, %v247_v12  ;;  %v248_v17 = vld [vmem:[%s1006_s9 + $0x50] sm:$0xff]  ;;  %v251_v18 = vld [vmem:[%s1006_s9 + $0x68] sm:$0xff]  ;;  %v253_v19 = vld [vmem:[%s1006_s9 + $0x78] sm:$0xff]  ;;  %s232_s5 = scalar_lea.vmem %s1112_s3, %s551_s8 }
  0x59   : > { %557 = vmatprep.subr.bf16.mxu0 %v556_v9  ;;  %617 = vmatprep.subr.bf16.mxu1 %v556_v9  ;;  %v562_v20 = vpack.c.bf16 %v248_v17, %v246_v16  ;;  %v564_v21 = vpack.c.bf16 %v253_v19, %v251_v18  ;;  %v250_v22 = vld [vmem:[%s1006_s9 + $0x60] sm:$0xff]  ;;  %v252_v23 = vld [vmem:[%s1006_s9 + $0x70] sm:$0xff]  ;;  %v255_v24 = vld [vmem:[%s1006_s9 + $0x88] sm:$0xff] }
  0x5a   : > { %v257_v25 = vld [vmem:[%s1006_s9 + $0x98] sm:$0xff]  ;;  %v566_v26 = vpack.c.bf16 %v252_v23, %v250_v22  ;;  %v254_v28 = vld [vmem:[%s1006_s9 + $0x80] sm:$0xff]  ;;  %v256_v29 = vld [vmem:[%s1006_s9 + $0x90] sm:$0xff] }
  0x5b   : > { %v568_v27 = vpack.c.bf16 %v257_v25, %v255_v24  ;;  %v259_v30 = vld [vmem:[%s1006_s9 + $0xa8] sm:$0xff]  ;;  %v261_v31 = vld [vmem:[%s1006_s9 + $0xb8] sm:$0xff]  ;;  %v570_v32 = vpack.c.bf16 %v256_v29, %v254_v28  ;;  %v258_v34 = vld [vmem:[%s1006_s9 + $0xa0] sm:$0xff] }
  0x5c   : > { %559 = vmatpush1.bf16.msra.mxu0 %v558_v14  ;;  %633 = vmatpush1.bf16.msra.mxu1 %v558_v14  ;;  %v572_v33 = vpack.c.bf16 %v261_v31, %v259_v30  ;;  %v260_v35 = vld [vmem:[%s1006_s9 + $0xb0] sm:$0xff]  ;;  %v263_v36 = vld [vmem:[%s1006_s9 + $0xc8] sm:$0xff]  ;;  %v265_v37 = vld [vmem:[%s1006_s9 + $0xd8] sm:$0xff] }
  0x5d   : > { %561 = vmatprep.subr.bf16.mxu0 %v560_v15  ;;  %618 = vmatprep.subr.bf16.mxu1 %v560_v15  ;;  %v574_v38 = vpack.c.bf16 %v260_v35, %v258_v34  ;;  %v262_v39 = vld [vmem:[%s1006_s9 + $0xc0] sm:$0xff]  ;;  %v576_v40 = vpack.c.bf16 %v265_v37, %v263_v36  ;;  %v264_v41 = vld [vmem:[%s1006_s9 + $0xd0] sm:$0xff]  ;;  %v235_v42 = vld [vmem:[#allocation2 + $0x8] sm:$0xff] }
  0x5e   : > { %v237_v43 = vld [vmem:[#allocation2 + $0x18] sm:$0x3]  ;;  %v267_v44 = vld [vmem:[%s1006_s9 + $0xe8] sm:$0xff]  ;;  %378 = vmatprep.mubr.f32.mxu0 %v235_v42  ;;  %v302_v46 = vld [vmem:[%s1110_s1] sm:$0xff]  ;;  %v578_v47 = vpack.c.bf16 %v264_v41, %v262_v39 }
  0x5f   : > { %v269_v45 = vld [vmem:[%s1006_s9 + $0xf8] sm:$0xff]  ;;  %384 = vmatprep.mubr.f32.mxu1 %v237_v43  ;;  %306 = vperm.xlu0 %717, %v302_v46   ;;  %v303_v48 = vld [vmem:[%s1110_s1 + $0x8] sm:$0x3]  ;;  %v266_v50 = vld [vmem:[%s1006_s9 + $0xe0] sm:$0xff] }
  0x60   : > { %563 = vmatpush1.bf16.msra.mxu0 %v562_v20  ;;  %634 = vmatpush1.bf16.msra.mxu1 %v562_v20  ;;  %v580_v49 = vpack.c.bf16 %v269_v45, %v267_v44  ;;  %v268_v51 = vld [vmem:[%s1006_s9 + $0xf0] sm:$0xff]  ;;  %v271_v52 = vld [vmem:[%s1006_s9 + $0x108] sm:$0xff]  ;;  %v273_v53 = vld [vmem:[%s1006_s9 + $0x118] sm:$0xff] }
  0x61   : > { %565 = vmatprep.subr.bf16.mxu0 %v564_v21  ;;  %619 = vmatprep.subr.bf16.mxu1 %v564_v21  ;;  %v582_v54 = vpack.c.bf16 %v268_v51, %v266_v50  ;;  %v584_v55 = vpack.c.bf16 %v273_v53, %v271_v52  ;;  %v270_v56 = vld [vmem:[%s1006_s9 + $0x100] sm:$0xff]  ;;  %v272_v57 = vld [vmem:[%s1006_s9 + $0x110] sm:$0xff]  ;;  %v275_v58 = vld [vmem:[%s1006_s9 + $0x128] sm:$0xff] }
  0x62   : > { %v277_v59 = vld [vmem:[%s1006_s9 + $0x138] sm:$0xff]  ;;  %v586_v60 = vpack.c.bf16 %v272_v57, %v270_v56  ;;  %v274_v62 = vld [vmem:[%s1006_s9 + $0x120] sm:$0xff]  ;;  %v276_v63 = vld [vmem:[%s1006_s9 + $0x130] sm:$0xff] }
  0x63   : > { %311 = vperm.xlu0 %717, %v303_v48   ;;  %v588_v61 = vpack.c.bf16 %v277_v59, %v275_v58  ;;  %v279_v0 = vld [vmem:[%s1006_s9 + $0x148] sm:$0xff]  ;;  %v281_v1 = vld [vmem:[%s1006_s9 + $0x158] sm:$0xff]  ;;  %v590_v2 = vpack.c.bf16 %v276_v63, %v274_v62  ;;  %v278_v4 = vld [vmem:[%s1006_s9 + $0x140] sm:$0xff] }
  0x64   : > { %567 = vmatpush1.bf16.msra.mxu0 %v566_v26  ;;  %635 = vmatpush1.bf16.msra.mxu1 %v566_v26  ;;  %v592_v3 = vpack.c.bf16 %v281_v1, %v279_v0  ;;  %v280_v5 = vld [vmem:[%s1006_s9 + $0x150] sm:$0xff]  ;;  %v283_v6 = vld [vmem:[%s1006_s9 + $0x168] sm:$0xff]  ;;  %v285_v7 = vld [vmem:[%s1006_s9 + $0x178] sm:$0xff] }
  0x65   : > { %569 = vmatprep.subr.bf16.mxu0 %v568_v27  ;;  %620 = vmatprep.subr.bf16.mxu1 %v568_v27  ;;  %v594_v8 = vpack.c.bf16 %v280_v5, %v278_v4  ;;  %v596_v9 = vpack.c.bf16 %v285_v7, %v283_v6  ;;  %v282_v10 = vld [vmem:[%s1006_s9 + $0x160] sm:$0xff]  ;;  %v284_v11 = vld [vmem:[%s1006_s9 + $0x170] sm:$0xff]  ;;  %v287_v12 = vld [vmem:[%s1006_s9 + $0x188] sm:$0xff] }
  0x66   : > { %v289_v13 = vld [vmem:[%s1006_s9 + $0x198] sm:$0xff]  ;;  %v598_v14 = vpack.c.bf16 %v284_v11, %v282_v10  ;;  %v286_v16 = vld [vmem:[%s1006_s9 + $0x180] sm:$0xff]  ;;  %v288_v17 = vld [vmem:[%s1006_s9 + $0x190] sm:$0xff] }
  0x67   : > { %v600_v15 = vpack.c.bf16 %v289_v13, %v287_v12  ;;  %v291_v18 = vld [vmem:[%s1006_s9 + $0x1a8] sm:$0xff]  ;;  %v293_v19 = vld [vmem:[%s1006_s9 + $0x1b8] sm:$0xff]  ;;  %v602_v20 = vpack.c.bf16 %v288_v17, %v286_v16  ;;  %v290_v22 = vld [vmem:[%s1006_s9 + $0x1a0] sm:$0xff] }
  0x68   : > { %571 = vmatpush1.bf16.msra.mxu0 %v570_v32  ;;  %636 = vmatpush1.bf16.msra.mxu1 %v570_v32  ;;  %v604_v21 = vpack.c.bf16 %v293_v19, %v291_v18  ;;  %v292_v23 = vld [vmem:[%s1006_s9 + $0x1b0] sm:$0xff]  ;;  %v295_v24 = vld [vmem:[%s1006_s9 + $0x1c8] sm:$0xff]  ;;  %v297_v25 = vld [vmem:[%s1006_s9 + $0x1d8] sm:$0xff] }
  0x69   : > { %573 = vmatprep.subr.bf16.mxu0 %v572_v33  ;;  %621 = vmatprep.subr.bf16.mxu1 %v572_v33  ;;  %v606_v26 = vpack.c.bf16 %v292_v23, %v290_v22  ;;  %v608_v27 = vpack.c.bf16 %v297_v25, %v295_v24  ;;  %v294_v28 = vld [vmem:[%s1006_s9 + $0x1c0] sm:$0xff]  ;;  %v296_v29 = vld [vmem:[%s1006_s9 + $0x1d0] sm:$0xff]  ;;  %v299_v30 = vld [vmem:[%s1006_s9 + $0x1e8] sm:$0xff] }
  0x6a   : > { %v301_v31 = vld [vmem:[%s1006_s9 + $0x1f8] sm:$0xff]  ;;  %v610_v32 = vpack.c.bf16 %v296_v29, %v294_v28  ;;  %v298_v34 = vld [vmem:[%s1006_s9 + $0x1e0] sm:$0xff]  ;;  %v300_v35 = vld [vmem:[%s1006_s9 + $0x1f0] sm:$0xff] }
  0x6b   : > { %v612_v33 = vpack.c.bf16 %v301_v31, %v299_v30  ;;  %v614_v36 = vpack.c.bf16 %v300_v35, %v298_v34  ;;  %v234_v37 = vld [vmem:[#allocation2] sm:$0xff] }
  0x6c   : > { %575 = vmatpush1.bf16.msra.mxu0 %v574_v38  ;;  %637 = vmatpush1.bf16.msra.mxu1 %v574_v38  ;;  %v236_v38 = vld [vmem:[#allocation2 + $0x10] sm:$0x3] }
  0x6d   : > { %577 = vmatprep.subr.bf16.mxu0 %v576_v40  ;;  %622 = vmatprep.subr.bf16.mxu1 %v576_v40  ;;  %v391_v40 = vlaneseq }
  0x6f   : > { %v392_v41 = vshrl.u32 %v391_v40, 7 }
  0x70   : > { %579 = vmatpush1.bf16.msra.mxu0 %v578_v47  ;;  %638 = vmatpush1.bf16.msra.mxu1 %v578_v47 }
  0x71   : > { %581 = vmatprep.subr.bf16.mxu0 %v580_v49  ;;  %623 = vmatprep.subr.bf16.mxu1 %v580_v49  ;;  %vm394_vm0 = vcmp.lt.s32.totalorder %v392_v41, 6 }
  0x74   : > { %583 = vmatpush1.bf16.msra.mxu0 %v582_v54  ;;  %639 = vmatpush1.bf16.msra.mxu1 %v582_v54 }
  0x75   : > { %585 = vmatprep.subr.bf16.mxu0 %v584_v55  ;;  %624 = vmatprep.subr.bf16.mxu1 %v584_v55 }
  0x78   : > { %587 = vmatpush1.bf16.msra.mxu0 %v586_v60  ;;  %640 = vmatpush1.bf16.msra.mxu1 %v586_v60 }
  0x79   : > { %589 = vmatprep.subr.bf16.mxu0 %v588_v61  ;;  %625 = vmatprep.subr.bf16.mxu1 %v588_v61 }
  0x7c   : > { %591 = vmatpush1.bf16.msra.mxu0 %v590_v2  ;;  %641 = vmatpush1.bf16.msra.mxu1 %v590_v2 }
  0x7d   : > { %593 = vmatprep.subr.bf16.mxu0 %v592_v3  ;;  %626 = vmatprep.subr.bf16.mxu1 %v592_v3 }
  0x80   : > { %595 = vmatpush1.bf16.msra.mxu0 %v594_v8  ;;  %642 = vmatpush1.bf16.msra.mxu1 %v594_v8 }
  0x81   : > { %597 = vmatprep.subr.bf16.mxu0 %v596_v9  ;;  %627 = vmatprep.subr.bf16.mxu1 %v596_v9 }
  0x84   : > { %599 = vmatpush1.bf16.msra.mxu0 %v598_v14  ;;  %643 = vmatpush1.bf16.msra.mxu1 %v598_v14 }
  0x85   : > { %601 = vmatprep.subr.bf16.mxu0 %v600_v15  ;;  %628 = vmatprep.subr.bf16.mxu1 %v600_v15 }
  0x88   : > { %603 = vmatpush1.bf16.msra.mxu0 %v602_v20  ;;  %644 = vmatpush1.bf16.msra.mxu1 %v602_v20 }
  0x89   : > { %605 = vmatprep.subr.bf16.mxu0 %v604_v21  ;;  %629 = vmatprep.subr.bf16.mxu1 %v604_v21 }
  0x8c   : > { %607 = vmatpush1.bf16.msra.mxu0 %v606_v26  ;;  %645 = vmatpush1.bf16.msra.mxu1 %v606_v26 }
  0x8d   : > { %609 = vmatprep.subr.bf16.mxu0 %v608_v27  ;;  %630 = vmatprep.subr.bf16.mxu1 %v608_v27 }
  0x90   : > { %611 = vmatpush1.bf16.msra.mxu0 %v610_v32  ;;  %646 = vmatpush1.bf16.msra.mxu1 %v610_v32 }
  0x91   : > { %613 = vmatprep.subr.bf16.mxu0 %v612_v33  ;;  %631 = vmatprep.subr.bf16.mxu1 %v612_v33 }
  0x94   : > { %615 = vmatpush1.bf16.msra.mxu0 %v614_v36  ;;  %647 = vmatpush1.bf16.msra.mxu1 %v614_v36 }
  0x97   : > { %379 = vmatmul.mubr.f32.vlgmr.msra.gmra.mrb[0].mxu0 %v234_v37  ;;  %385 = vmatmul.mubr.f32.vlgmr.msra.gmra.mrb[0].mxu1 %v236_v38 }
  0xde   : > { %v307_v39 = vpop.permute.xlu0 %306 }
  0xe2   : > { %v312_v42 = vpop.permute.xlu0 %311 }
 0x16a   : > { %v380_v43 = vpop.f32.mrb[0].mxu0  ;;  %v386_v44 = vpop.f32.mrb[0].mxu1 }
 0x16b   : > { %v381_v45 = vadd.f32 %v380_v43, %v307_v39  ;;  %v387_v46 = vadd.f32 %v386_v44, %v312_v42  ;;  %v382_v47 = vpop.f32.mrb[1].mxu0  ;;  %v388_v48 = vpop.f32.mrb[1].mxu1 }
 0x16c   : > { %v383_v49 = vadd.f32 %v382_v47, %v307_v39  ;;  %v389_v50 = vadd.f32 %v388_v48, %v312_v42 }
 0x16d   : > { %v396_v51 = vsub.f32 0.0, %v381_v45  ;;  %v408_v52 = vmul.f32 1.442695, %v387_v46 }
 0x16e   : > { %v397_v53 = vsub.f32 0.0, %v383_v49  ;;  %v410_v54 = vmul.f32 1.442695, %v389_v50 }
 0x16f   : > { %v400_v55 = vsel %vm394_vm0, %v396_v51, %v381_v45  ;;  %718 = vpow2.f32 %v408_v52 }
 0x170   : > { %v404_v56 = vmul.f32 1.442695, %v400_v55  ;;  %v401_v57 = vsel %vm394_vm0, %v397_v53, %v383_v49  ;;  %720 = vpow2.f32 %v410_v54 }
 0x171   : > { %v406_v58 = vmul.f32 1.442695, %v401_v57 }
 0x172   : > { %722 = vpow2.f32 %v404_v56 }
 0x173   : > { %724 = vpow2.f32 %v406_v58 }
 0x179   : > { %v719_v59 = vpop.eup %718 }
 0x17a   : > { %v721_v60 = vpop.eup %720  ;;  %426 = vst [vmem:[%s232_s5 + $0x10] sm:$0x3] %v719_v59 }
 0x17b   : > { %427 = vst [vmem:[%s232_s5 + $0x18] sm:$0x3] %v721_v60 }
 0x17c   : > { %v723_v61 = vpop.eup %722 }
 0x17d   : > { %v725_v62 = vpop.eup %724  ;;  %v412_v63 = vadd.f32 1.0, %v723_v61 }
 0x17e   : > { %v413_v0 = vadd.f32 1.0, %v725_v62 }
 0x17f   : > { %726 = vrcp.f32 %v412_v63 }
 0x180   : > { %728 = vrcp.f32 %v413_v0 }
 0x189   : > { %v727_v1 = vpop.eup %726 }
 0x18a   : > { %v729_v2 = vpop.eup %728  ;;  %v420_v3 = vsel %vm394_vm0, %v727_v1, %v723_v61 }
 0x18b   : > { %424 = vst [vmem:[%s232_s5] sm:$0xff] %v420_v3  ;;  %v421_v4 = vsel %vm394_vm0, %v729_v2, %v725_v62 }
 0x18c   : > { %425 = vst [vmem:[%s232_s5 + $0x8] sm:$0xff] %v421_v4 }
 0x18d PF: > { %s17_s17 = sadd.s32 1, %s842_s17   ;;  %s1125_s12 = smov %s826_s13 }
 0x18e   : > { %p14_p1 = scmp.ge.s32.totalorder %s17_s17, 4   ;;  %s1126_s13 = smov %s830_s14 }
 0x18f   : > { %s1127_s14 = smov %s955_s26  ;;  %s1128_s15 = smov %s838_s16 }
 0x190   : > { %s1129_s16 = smov %s1131_s25  ;;  %16 = sbr.rel (!%p14_p1) target bundleno = 5 (0x5), region = 77 }
 0x197   :  { %458 = vsyncpa [#allocation3], 1 }
 0x198   :  { %460 = vsyncpa [#allocation3 + $0x1], 1 }
 0x199   :  { %461 = vsyncpa [#allocation5], 1 }
 0x19a   :  { %463 = vsyncpa [#allocation5 + $0x1], 1 }

</bundles_post_ra>
